<compile_context>
chip_gen: v6e
topology: v6e:2x2x1
jax: 0.10.0
libtpu: 0.0.40
codegen_flags: <defaults>
</compile_context>

<pallas_src>
import functools

import jax
import jax.numpy as jnp
from jax.experimental import pallas as pl
from jax.experimental.pallas import tpu as pltpu

INPUT_SIZE = 24
ACTION_SIZE = 5
FC1_UNITS = 36
LN_EPS = 1e-5


def _round_up(n, m):
    return ((n + m - 1) // m) * m


def _policy_kernel(x_ref, w1t_ref, b1_ref, g_ref, beta_ref, w2t_ref, b2_ref,
                   o_ref):
    # x_ref:   (TB, IN)   batch tile (possibly ragged at the end of the grid)
    # w1t_ref: (IN, F1)   fc1 weight, pre-transposed
    # b1/g/beta: (1, F1)  fc1 bias, LayerNorm gamma/beta
    # w2t_ref: (F1, A)    fc2 weight, pre-transposed; b2_ref: (1, A)
    # o_ref:   (TB, A)    batch-major output tile
    x = x_ref[...]

    # fc1 on the MXU with f32 accumulation.
    h = jnp.dot(x, w1t_ref[...], preferred_element_type=jnp.float32)
    h = h + b1_ref[...]                                    # (TB, F1) + (1, F1)

    # LayerNorm over the feature (lane) axis — single pass, biased variance
    # like torch.nn.LayerNorm.
    mean = jnp.mean(h, axis=-1, keepdims=True)             # (TB, 1)
    m2 = jnp.mean(h * h, axis=-1, keepdims=True)
    var = jnp.maximum(m2 - mean * mean, 0.0)
    h = (h - mean) * jax.lax.rsqrt(var + LN_EPS)
    h = h * g_ref[...] + beta_ref[...]

    # ReLU + fc2, emitted batch-major.
    h = jnp.maximum(h, 0.0)
    out = jnp.dot(h, w2t_ref[...], preferred_element_type=jnp.float32)
    o_ref[...] = out + b2_ref[...]


@functools.partial(
    jax.jit, static_argnames=("input_size", "block_batch", "compute_dtype")
)
def policy_imitation_forward(
    x, params, *, input_size=INPUT_SIZE, block_batch=8192,
    compute_dtype=jnp.bfloat16,
):
    """Flatten like torch's x.view(-1, input_size), run the tiled Pallas kernel."""
    w1, b1, g, beta, w2, b2 = params
    fc1_units = w1.shape[0]
    action_size = w2.shape[0]

    x2d = x.reshape(-1, input_size).astype(compute_dtype)
    batch = x2d.shape[0]

    # Batch tile: multiple of 128 (lane-friendly activations).  Keep >= 2 grid
    # steps when there is enough work so v7x megacore can split the batch axis.
    if batch > 256:
        tb_cap = _round_up(pl.cdiv(batch, 2), 128)
    else:
        tb_cap = _round_up(max(batch, 1), 128)
    tb = max(128, min(_round_up(block_batch, 128), tb_cap))
    grid = (pl.cdiv(batch, tb),)

    # Tiny per-call weight relayouts (a few KB; keeps both dots MXU-natural).
    w1t = w1.T.astype(compute_dtype)                 # (IN, F1)
    w2t = w2.T.astype(jnp.float32)                   # (F1, A)
    b1r = b1.reshape(1, fc1_units).astype(jnp.float32)
    gr = g.reshape(1, fc1_units).astype(jnp.float32)
    betar = beta.reshape(1, fc1_units).astype(jnp.float32)
    b2r = b2.reshape(1, action_size).astype(jnp.float32)

    itemsize = jnp.dtype(compute_dtype).itemsize
    # VMEM budget: lane-padded (->128) blocks, double-buffered I/O, a handful
    # of f32 activation temps.  Capped at 48 MiB for v7x's 64 MiB VMEM.
    x_blk = tb * 128 * max(itemsize, 2)
    out_blk = tb * 128 * 4
    act_blk = tb * 128 * 4
    vmem_limit = int(
        min(48 << 20,
            max(16 << 20, 2 * x_blk + 2 * out_blk + 6 * act_blk + (4 << 20)))
    )

    cost = pl.CostEstimate(
        flops=2 * batch * (input_size * fc1_units + fc1_units * action_size)
        + 10 * batch * fc1_units,
        transcendentals=batch,
        bytes_accessed=batch * (input_size * itemsize + action_size * 4)
        + itemsize * w1.size + 4 * (w2.size + 4 * fc1_units + action_size),
    )

    out = pl.pallas_call(
        _policy_kernel,
        out_shape=jax.ShapeDtypeStruct((batch, action_size), jnp.float32),
        grid=grid,
        in_specs=[
            pl.BlockSpec((tb, input_size), lambda i: (i, 0)),           # x tile
            pl.BlockSpec((input_size, fc1_units), lambda i: (0, 0)),    # W1^T
            pl.BlockSpec((1, fc1_units), lambda i: (0, 0)),             # b1
            pl.BlockSpec((1, fc1_units), lambda i: (0, 0)),             # LN gamma
            pl.BlockSpec((1, fc1_units), lambda i: (0, 0)),             # LN beta
            pl.BlockSpec((fc1_units, action_size), lambda i: (0, 0)),   # W2^T
            pl.BlockSpec((1, action_size), lambda i: (0, 0)),           # b2
        ],
        out_specs=pl.BlockSpec((tb, action_size), lambda i: (i, 0)),
        compiler_params=pltpu.CompilerParams(
            dimension_semantics=("parallel",),
            vmem_limit_bytes=vmem_limit,
        ),
        cost_estimate=cost,
    )(x2d, w1t, b1r, gr, betar, w2t, b2r)
    return out


def init_params(key, input_size=INPUT_SIZE, action_size=ACTION_SIZE,
                fc1_units=FC1_UNITS):
    """Deterministic parameter init mimicking nn.Linear / nn.LayerNorm layouts."""
    k1, k2, k3, k4 = jax.random.split(key, 4)
    bound1 = 1.0 / jnp.sqrt(float(input_size))
    bound2 = 1.0 / jnp.sqrt(float(fc1_units))
    # torch layout: weight is [out_features, in_features]; biases are 1-D.
    w1 = jax.random.uniform(k1, (fc1_units, input_size), jnp.float32, -bound1, bound1)
    b1 = jax.random.uniform(k2, (fc1_units,), jnp.float32, -bound1, bound1)
    g = jnp.ones((fc1_units,), jnp.float32)          # LayerNorm weight
    beta = jnp.zeros((fc1_units,), jnp.float32)      # LayerNorm bias
    w2 = jax.random.uniform(k3, (action_size, fc1_units), jnp.float32, -bound2, bound2)
    b2 = jax.random.uniform(k4, (action_size,), jnp.float32, -bound2, bound2)
    return (w1, b1, g, beta, w2, b2)


def _reference(x, params, input_size=INPUT_SIZE):
    """Pure-JAX reference with torch semantics (two-pass LayerNorm)."""
    w1, b1, g, beta, w2, b2 = params
    x2d = x.reshape(-1, input_size).astype(jnp.float32)
    h = x2d @ w1.T + b1
    mean = jnp.mean(h, axis=-1, keepdims=True)
    var = jnp.mean((h - mean) ** 2, axis=-1, keepdims=True)
    hn = (h - mean) / jnp.sqrt(var + LN_EPS) * g + beta
    return jnp.maximum(hn, 0.0) @ w2.T + b2


if __name__ == "__main__":
    key = jax.random.PRNGKey(0)
    kx, kp = jax.random.split(key)
    params = init_params(kp)

    # Small input consistent with the module: view(-1, 24) -> (4, 24); f32 path.
    x = jax.random.normal(kx, (2, 2, INPUT_SIZE), dtype=jnp.float32)
    out = jax.block_until_ready(
        policy_imitation_forward(x, params, compute_dtype=jnp.float32)
    )
    ref = _reference(x, params)
    assert out.shape == (4, ACTION_SIZE), out.shape
    assert jnp.allclose(out, ref, atol=1e-4, rtol=1e-4), (
        float(jnp.max(jnp.abs(out - ref)))
    )

    # Larger batch: multi-tile grid with a ragged final block (no pad / slice).
    xb = jax.random.normal(kx, (300, INPUT_SIZE), dtype=jnp.float32)
    outb = jax.block_until_ready(
        policy_imitation_forward(xb, params, block_batch=128,
                                 compute_dtype=jnp.float32)
    )
    refb = _reference(xb, params)
    assert outb.shape == (300, ACTION_SIZE), outb.shape
    assert jnp.allclose(outb, refb, atol=1e-4, rtol=1e-4), (
        float(jnp.max(jnp.abs(outb - refb)))
    )

    # Default path: bf16 input stream (halves the dominant HBM read).  Loose
    # tolerance reflects real bf16 input-quantization error, by design.
    outbf = jax.block_until_ready(policy_imitation_forward(xb, params))
    assert outbf.shape == refb.shape
    assert bool(jnp.all(jnp.isfinite(outbf)))
    assert jnp.allclose(outbf, refb, atol=0.25, rtol=0.25), (
        float(jnp.max(jnp.abs(outbf - refb)))
    )

    print("KERNEL_OK")
</pallas_src>

<mosaic_0001>
module attributes {stable_mosaic.version = 11 : i64} {
  func.func @_policy_kernel(%arg0: i32, %arg1: memref<128x24xf32, #tpu.memory_space<vmem>>, %arg2: memref<24x36xf32, #tpu.memory_space<vmem>>, %arg3: memref<1x36xf32, #tpu.memory_space<vmem>>, %arg4: memref<1x36xf32, #tpu.memory_space<vmem>>, %arg5: memref<1x36xf32, #tpu.memory_space<vmem>>, %arg6: memref<36x5xf32, #tpu.memory_space<vmem>>, %arg7: memref<1x5xf32, #tpu.memory_space<vmem>>, %arg8: memref<128x5xf32, #tpu.memory_space<vmem>>) attributes {dimension_semantics = [#tpu.dimension_semantics<parallel>], iteration_bounds = array<i64: 1>, scalar_prefetch = 0 : i64, scratch_operands = 0 : i64, tpu.core_type = #tpu.core_type<tc>, window_params = [{transform_indices = @transform_0, window_bounds = array<i64: 128, 24>}, {pipeline_mode = #tpu.pipeline_mode<synchronous>, transform_indices = @transform_1, window_bounds = array<i64: 24, 36>}, {pipeline_mode = #tpu.pipeline_mode<synchronous>, transform_indices = @transform_2, window_bounds = array<i64: 1, 36>}, {pipeline_mode = #tpu.pipeline_mode<synchronous>, transform_indices = @transform_3, window_bounds = array<i64: 1, 36>}, {pipeline_mode = #tpu.pipeline_mode<synchronous>, transform_indices = @transform_4, window_bounds = array<i64: 1, 36>}, {pipeline_mode = #tpu.pipeline_mode<synchronous>, transform_indices = @transform_5, window_bounds = array<i64: 36, 5>}, {pipeline_mode = #tpu.pipeline_mode<synchronous>, transform_indices = @transform_6, window_bounds = array<i64: 1, 5>}, {transform_indices = @transform_7, window_bounds = array<i64: 128, 5>}]} {
    %c0 = arith.constant 0 : index
    %c0_0 = arith.constant 0 : index
    %0 = vector.load %arg1[%c0, %c0_0] : memref<128x24xf32, #tpu.memory_space<vmem>>, vector<128x24xf32>
    %c0_1 = arith.constant 0 : index
    %c0_2 = arith.constant 0 : index
    %1 = vector.load %arg2[%c0_1, %c0_2] : memref<24x36xf32, #tpu.memory_space<vmem>>, vector<24x36xf32>
    %cst = arith.constant dense<0.000000e+00> : vector<128x36xf32>
    %2 = tpu.matmul %0, %1, %cst {dimension_numbers = #tpu.dot_dimension_numbers<[1], [0], [0], [1], [0, 0, 1, 1], [], []>} : vector<128x24xf32>, vector<24x36xf32>, vector<128x36xf32> -> vector<128x36xf32>
    %c0_3 = arith.constant 0 : index
    %c0_4 = arith.constant 0 : index
    %3 = vector.load %arg3[%c0_3, %c0_4] : memref<1x36xf32, #tpu.memory_space<vmem>>, vector<1x36xf32>
    %4 = vector.broadcast %3 : vector<1x36xf32> to vector<128x36xf32>
    %5 = arith.addf %2, %4 : vector<128x36xf32>
    %cst_5 = arith.constant dense<0.000000e+00> : vector<128xf32>
    %6 = vector.multi_reduction <add>, %5, %cst_5 [1] : vector<128x36xf32> to vector<128xf32>
    %7 = vector.shape_cast %6 : vector<128xf32> to vector<128x1xf32>
    %cst_6 = arith.constant 3.600000e+01 : f32
    %8 = vector.broadcast %cst_6 : f32 to vector<128x1xf32>
    %9 = arith.divf %7, %8 : vector<128x1xf32>
    %10 = arith.mulf %5, %5 : vector<128x36xf32>
    %cst_7 = arith.constant dense<0.000000e+00> : vector<128xf32>
    %11 = vector.multi_reduction <add>, %10, %cst_7 [1] : vector<128x36xf32> to vector<128xf32>
    %12 = vector.shape_cast %11 : vector<128xf32> to vector<128x1xf32>
    %cst_8 = arith.constant 3.600000e+01 : f32
    %13 = vector.broadcast %cst_8 : f32 to vector<128x1xf32>
    %14 = arith.divf %12, %13 : vector<128x1xf32>
    %15 = arith.mulf %9, %9 : vector<128x1xf32>
    %16 = arith.subf %14, %15 : vector<128x1xf32>
    %cst_9 = arith.constant 0.000000e+00 : f32
    %17 = vector.broadcast %cst_9 : f32 to vector<128x1xf32>
    %18 = arith.maximumf %16, %17 : vector<128x1xf32>
    %19 = vector.broadcast %9 : vector<128x1xf32> to vector<128x36xf32>
    %20 = arith.subf %5, %19 : vector<128x36xf32>
    %cst_10 = arith.constant 9.99999974E-6 : f32
    %21 = vector.broadcast %cst_10 : f32 to vector<128x1xf32>
    %22 = arith.addf %18, %21 : vector<128x1xf32>
    %23 = math.rsqrt %22 : vector<128x1xf32>
    %24 = vector.broadcast %23 : vector<128x1xf32> to vector<128x36xf32>
    %25 = arith.mulf %20, %24 : vector<128x36xf32>
    %c0_11 = arith.constant 0 : index
    %c0_12 = arith.constant 0 : index
    %26 = vector.load %arg4[%c0_11, %c0_12] : memref<1x36xf32, #tpu.memory_space<vmem>>, vector<1x36xf32>
    %27 = vector.broadcast %26 : vector<1x36xf32> to vector<128x36xf32>
    %28 = arith.mulf %25, %27 : vector<128x36xf32>
    %c0_13 = arith.constant 0 : index
    %c0_14 = arith.constant 0 : index
    %29 = vector.load %arg5[%c0_13, %c0_14] : memref<1x36xf32, #tpu.memory_space<vmem>>, vector<1x36xf32>
    %30 = vector.broadcast %29 : vector<1x36xf32> to vector<128x36xf32>
    %31 = arith.addf %28, %30 : vector<128x36xf32>
    %cst_15 = arith.constant 0.000000e+00 : f32
    %32 = vector.broadcast %cst_15 : f32 to vector<128x36xf32>
    %33 = arith.maximumf %31, %32 : vector<128x36xf32>
    %c0_16 = arith.constant 0 : index
    %c0_17 = arith.constant 0 : index
    %34 = vector.load %arg6[%c0_16, %c0_17] : memref<36x5xf32, #tpu.memory_space<vmem>>, vector<36x5xf32>
    %cst_18 = arith.constant dense<0.000000e+00> : vector<128x5xf32>
    %35 = tpu.matmul %33, %34, %cst_18 {dimension_numbers = #tpu.dot_dimension_numbers<[1], [0], [0], [1], [0, 0, 1, 1], [], []>} : vector<128x36xf32>, vector<36x5xf32>, vector<128x5xf32> -> vector<128x5xf32>
    %c0_19 = arith.constant 0 : index
    %c0_20 = arith.constant 0 : index
    %36 = vector.load %arg7[%c0_19, %c0_20] : memref<1x5xf32, #tpu.memory_space<vmem>>, vector<1x5xf32>
    %37 = vector.broadcast %36 : vector<1x5xf32> to vector<128x5xf32>
    %38 = arith.addf %35, %37 : vector<128x5xf32>
    %c0_21 = arith.constant 0 : index
    %c0_22 = arith.constant 0 : index
    %39 = vector.load %arg8[%c0_21, %c0_22] : memref<128x5xf32, #tpu.memory_space<vmem>>, vector<128x5xf32>
    tpu.vector_store %arg8[%c0_21, %c0_22], %38 {strides = array<i32>} : memref<128x5xf32, #tpu.memory_space<vmem>>, vector<128x5xf32>,
    return
  }
  func.func @transform_0(%arg0: i32) -> (i32, i32) {
    %c0_i32 = arith.constant 0 : i32
    %c0_i32_0 = arith.constant 0 : i32
    return %arg0, %c0_i32 : i32, i32
  }
  func.func @transform_1(%arg0: i32) -> (i32, i32) {
    %c0_i32 = arith.constant 0 : i32
    %c0_i32_0 = arith.constant 0 : i32
    %c0_i32_1 = arith.constant 0 : i32
    return %c0_i32, %c0_i32_0 : i32, i32
  }
  func.func @transform_2(%arg0: i32) -> (i32, i32) {
    %c0_i32 = arith.constant 0 : i32
    %c0_i32_0 = arith.constant 0 : i32
    %c0_i32_1 = arith.constant 0 : i32
    return %c0_i32, %c0_i32_0 : i32, i32
  }
  func.func @transform_3(%arg0: i32) -> (i32, i32) {
    %c0_i32 = arith.constant 0 : i32
    %c0_i32_0 = arith.constant 0 : i32
    %c0_i32_1 = arith.constant 0 : i32
    return %c0_i32, %c0_i32_0 : i32, i32
  }
  func.func @transform_4(%arg0: i32) -> (i32, i32) {
    %c0_i32 = arith.constant 0 : i32
    %c0_i32_0 = arith.constant 0 : i32
    %c0_i32_1 = arith.constant 0 : i32
    return %c0_i32, %c0_i32_0 : i32, i32
  }
  func.func @transform_5(%arg0: i32) -> (i32, i32) {
    %c0_i32 = arith.constant 0 : i32
    %c0_i32_0 = arith.constant 0 : i32
    %c0_i32_1 = arith.constant 0 : i32
    return %c0_i32, %c0_i32_0 : i32, i32
  }
  func.func @transform_6(%arg0: i32) -> (i32, i32) {
    %c0_i32 = arith.constant 0 : i32
    %c0_i32_0 = arith.constant 0 : i32
    %c0_i32_1 = arith.constant 0 : i32
    return %c0_i32, %c0_i32_0 : i32, i32
  }
  func.func @transform_7(%arg0: i32) -> (i32, i32) {
    %c0_i32 = arith.constant 0 : i32
    %c0_i32_0 = arith.constant 0 : i32
    return %arg0, %c0_i32 : i32, i32
  }
}

</mosaic_0001>

<bundles_post_ra>
// kernel: policy_imitation_forward.1
= control target key start
LH: loop header
LB: loop body
LE: loop exit
PB: predicated region body
PF: predicated region fallthrough
CT: control target
= control target key end

     0   :  { %12 = vsyncpa [#allocation3], 0  ;;  %vm53_vm0 = vcmask 195584   ;;  %vm247_vm1 = vcmask 293888   ;;  %vm627_vm2 = vcmask 1043456   ;;  %vm776_vm3 = vcmask 39936   ;;  %s1437_s0 = inlined_call_operand.vmem [shape: f32[4,24], index: 0, kind: input, shape index: {}]   ;;  %s1438_s1 = inlined_call_operand.vmem [shape: f32[24,36], index: 1, kind: input, shape index: {}]   ;;  %s1439_s2 = inlined_call_operand.vmem [shape: f32[1,36], index: 2, kind: input, shape index: {}]   ;;  %s1440_s3 = inlined_call_operand.vmem [shape: f32[1,36], index: 3, kind: input, shape index: {}]   ;;  %s1441_s4 = inlined_call_operand.vmem [shape: f32[1,36], index: 4, kind: input, shape index: {}]   ;;  %s1442_s5 = inlined_call_operand.vmem [shape: f32[36,5], index: 5, kind: input, shape index: {}]   ;;  %s1443_s6 = inlined_call_operand.vmem [shape: f32[1,5], index: 6, kind: input, shape index: {}]   ;;  %s1444_s7 = inlined_call_operand.hbm [shape: f32[4,5], index: 7, kind: output, shape index: {}]  }
   0x1   :  { %v45_v0 = vld [vmem:[%s1438_s1 + $0x10] sm:$0xff]  ;;  %v44_v1 = vld [vmem:[%s1438_s1 + $0x8] sm:$0xff]  ;;  %v27_v2 = vld [vmem:[%s1437_s0] sm:$0xff] }
   0x2   :  { %886 = vmatprep.subr.mxu0 %v45_v0  ;;  %v43_v3 = vld [vmem:[%s1438_s1] sm:$0xff]  ;;  %892 = vmatprep.mubr.msk.f32.mxu0 %vm53_vm0, %v27_v2  ;;  %v28_v4 = vld [vmem:[%s1437_s0 + $0x8] sm:$0xff]  ;;  %v29_v5 = vld [vmem:[%s1437_s0 + $0x10] sm:$0xff] }
   0x3   :  { %887 = vmatpush3.msra.mxu0 %v45_v0  ;;  %v30_v6 = vld [vmem:[%s1437_s0 + $0x18] sm:$0xff]  ;;  %v31_v7 = vld [vmem:[%s1437_s0 + $0x20] sm:$0xff]  ;;  %v32_v8 = vld [vmem:[%s1437_s0 + $0x28] sm:$0xff] }
   0x4   :  { %888 = vmatprep.subr.mxu0 %v44_v1  ;;  %v33_v9 = vld [vmem:[%s1437_s0 + $0x30] sm:$0xff]  ;;  %v34_v10 = vld [vmem:[%s1437_s0 + $0x38] sm:$0xff]  ;;  %v35_v11 = vld [vmem:[%s1437_s0 + $0x40] sm:$0xff] }
   0x5   :  { %889 = vmatpush3.msra.mxu0 %v44_v1  ;;  %v36_v12 = vld [vmem:[%s1437_s0 + $0x48] sm:$0xff]  ;;  %v37_v13 = vld [vmem:[%s1437_s0 + $0x50] sm:$0xff]  ;;  %v38_v14 = vld [vmem:[%s1437_s0 + $0x58] sm:$0xff] }
   0x6   :  { %890 = vmatprep.subr.mxu0 %v43_v3  ;;  %v39_v15 = vld [vmem:[%s1437_s0 + $0x60] sm:$0xff]  ;;  %v40_v16 = vld [vmem:[%s1437_s0 + $0x68] sm:$0xff]  ;;  %v41_v17 = vld [vmem:[%s1437_s0 + $0x70] sm:$0xff] }
   0x7   :  { %891 = vmatpush3.msra.mxu0 %v43_v3  ;;  %v42_v18 = vld [vmem:[%s1437_s0 + $0x78] sm:$0xff]  ;;  %v1126_v19 = vld [vmem:[%s1439_s2] ss:$0 sm:$0xff] }
   0x8   :  { %893 = vmatmul.mubr.msk.f32.vlgmr.msra.gmra.mxu0 %vm53_vm0, %v28_v4 }
   0x9   :  { %895 = vmatprep.mubr.msk.f32.mxu0 %vm53_vm0, %v29_v5 }
   0xc   :  { %896 = vmatmul.mubr.msk.f32.gmra.mxu0 %vm53_vm0, %v30_v6 }
   0xd   :  { %898 = vmatprep.mubr.msk.f32.mxu0 %vm53_vm0, %v31_v7 }
  0x10   :  { %899 = vmatmul.mubr.msk.f32.gmra.mxu0 %vm53_vm0, %v32_v8 }
  0x11   :  { %901 = vmatprep.mubr.msk.f32.mxu0 %vm53_vm0, %v33_v9 }
  0x14   :  { %902 = vmatmul.mubr.msk.f32.gmra.mxu0 %vm53_vm0, %v34_v10 }
  0x15   :  { %904 = vmatprep.mubr.msk.f32.mxu0 %vm53_vm0, %v35_v11 }
  0x18   :  { %905 = vmatmul.mubr.msk.f32.gmra.mxu0 %vm53_vm0, %v36_v12  ;;  %v571_v12 = vld [vmem:[%s1442_s5 + $0x20] sm:$0xf] }
  0x19   :  { %907 = vmatprep.mubr.msk.f32.mxu0 %vm53_vm0, %v37_v13  ;;  %916 = vmatprep.subr.msk.mxu1 %vm627_vm2, %v571_v12 }
  0x1a   :  { %917 = vmatpush3.msk.msra.mxu1 %vm627_vm2, %v571_v12 }
  0x1c   :  { %908 = vmatmul.mubr.msk.f32.gmra.mxu0 %vm53_vm0, %v38_v14 }
  0x1d   :  { %910 = vmatprep.mubr.msk.f32.mxu0 %vm53_vm0, %v39_v15  ;;  %v570_v15 = vld [vmem:[%s1442_s5 + $0x18] sm:$0xff] }
  0x1e   :  { %918 = vmatprep.subr.mxu1 %v570_v15 }
  0x1f   :  { %919 = vmatpush3.msra.mxu1 %v570_v15 }
  0x20   :  { %911 = vmatmul.mubr.msk.f32.gmra.mxu0 %vm53_vm0, %v40_v16 }
  0x21   :  { %913 = vmatprep.mubr.msk.f32.mxu0 %vm53_vm0, %v41_v17 }
  0x24   :  { %914 = vmatmul.mubr.msk.f32.gmra.mxu0 %vm53_vm0, %v42_v18 }
  0xc8   :  { %v894_v20 = vpop.f32.mrf.mxu0 }
  0xc9   :  { %v1129_v21 = vadd.f32 %v894_v20, %v1126_v19  ;;  %v569_v20 = vld [vmem:[%s1442_s5 + $0x10] sm:$0xff] }
  0xca   :  { %v168_v22 = vpop.f32.mrf.mxu0  ;;  %920 = vmatprep.subr.mxu1 %v569_v20 }
  0xcb   :  { %v1132_v23 = vadd.f32 %v1126_v19, %v168_v22  ;;  %v251_v24 = vsel %vm247_vm1, %v1129_v21, 0.0  ;;  %v314_v25 = vmul.f32 %v1129_v21, %v1129_v21  ;;  %921 = vmatpush3.msra.mxu1 %v569_v20 }
  0xcc   :  { %252 = vadd.xlane.f32.xlu0 %v251_v24  ;;  %v897_v26 = vpop.f32.mrf.mxu0 }
  0xcd   :  { %v332_v27 = vsel %vm247_vm1, %v314_v25, 0.0  ;;  %v313_v28 = vmul.f32 %v1132_v23, %v1132_v23  ;;  %v248_v31 = vsel %vm247_vm1, %v1132_v23, 0.0  ;;  %v1147_v33 = vadd.f32 %v897_v26, %v1126_v19  ;;  %v568_v25 = vld [vmem:[%s1442_s5 + $0x8] sm:$0xff] }
  0xce   :  { %333 = vadd.xlane.f32.xlu1 %v332_v27  ;;  %v178_v29 = vpop.f32.mrf.mxu0  ;;  %922 = vmatprep.subr.mxu1 %v568_v25 }
  0xcf   :  { %v1142_v30 = vadd.f32 %v1126_v19, %v178_v29  ;;  %v329_v34 = vsel %vm247_vm1, %v313_v28, 0.0  ;;  %v257_v38 = vsel %vm247_vm1, %v1147_v33, 0.0  ;;  %v316_v40 = vmul.f32 %v1147_v33, %v1147_v33  ;;  %923 = vmatpush3.msra.mxu1 %v568_v25  ;;  %v567_v29 = vld [vmem:[%s1442_s5] sm:$0xff] }
  0xd0   :  { %249 = vadd.xlane.f32.xlu0 %v248_v31  ;;  %v900_v32 = vpop.f32.mrf.mxu0  ;;  %924 = vmatprep.subr.mxu1 %v567_v29 }
  0xd1   :  { %v254_v35 = vsel %vm247_vm1, %v1142_v30, 0.0  ;;  %v315_v37 = vmul.f32 %v1142_v30, %v1142_v30  ;;  %v1163_v43 = vadd.f32 %v900_v32, %v1126_v19  ;;  %v338_v44 = vsel %vm247_vm1, %v316_v40, 0.0  ;;  %925 = vmatpush3.msra.mxu1 %v567_v29 }
  0xd2   :  { %330 = vadd.xlane.f32.xlu1 %v329_v34  ;;  %v188_v36 = vpop.f32.mrf.mxu0 }
  0xd3   :  { %v1157_v39 = vadd.f32 %v1126_v19, %v188_v36  ;;  %v335_v42 = vsel %vm247_vm1, %v315_v37, 0.0  ;;  %v263_v48 = vsel %vm247_vm1, %v1163_v43, 0.0  ;;  %v318_v50 = vmul.f32 %v1163_v43, %v1163_v43 }
  0xd4   :  { %255 = vadd.xlane.f32.xlu0 %v254_v35  ;;  %v903_v41 = vpop.f32.mrf.mxu0 }
  0xd5   :  { %v260_v45 = vsel %vm247_vm1, %v1157_v39, 0.0  ;;  %v317_v47 = vmul.f32 %v1157_v39, %v1157_v39  ;;  %v1179_v53 = vadd.f32 %v903_v41, %v1126_v19  ;;  %v344_v54 = vsel %vm247_vm1, %v318_v50, 0.0 }
  0xd6   :  { %258 = vadd.xlane.f32.xlu1 %v257_v38  ;;  %v198_v46 = vpop.f32.mrf.mxu0 }
  0xd7   :  { %v1173_v49 = vadd.f32 %v1126_v19, %v198_v46  ;;  %v341_v52 = vsel %vm247_vm1, %v317_v47, 0.0  ;;  %v269_v58 = vsel %vm247_vm1, %v1179_v53, 0.0  ;;  %v320_v60 = vmul.f32 %v1179_v53, %v1179_v53 }
  0xd8   :  { %336 = vadd.xlane.f32.xlu0 %v335_v42  ;;  %v906_v51 = vpop.f32.mrf.mxu0 }
  0xd9   :  { %v266_v55 = vsel %vm247_vm1, %v1173_v49, 0.0  ;;  %v319_v57 = vmul.f32 %v1173_v49, %v1173_v49  ;;  %v1195_v63 = vadd.f32 %v906_v51, %v1126_v19  ;;  %v350_v0 = vsel %vm247_vm1, %v320_v60, 0.0 }
  0xda   :  { %339 = vadd.xlane.f32.xlu1 %v338_v44  ;;  %v208_v56 = vpop.f32.mrf.mxu0 }
  0xdb   :  { %v1189_v59 = vadd.f32 %v1126_v19, %v208_v56  ;;  %v347_v62 = vsel %vm247_vm1, %v319_v57, 0.0  ;;  %v275_v4 = vsel %vm247_vm1, %v1195_v63, 0.0  ;;  %v322_v6 = vmul.f32 %v1195_v63, %v1195_v63 }
  0xdc   :  { %261 = vadd.xlane.f32.xlu0 %v260_v45  ;;  %v909_v61 = vpop.f32.mrf.mxu0 }
  0xdd   :  { %v272_v1 = vsel %vm247_vm1, %v1189_v59, 0.0  ;;  %v321_v3 = vmul.f32 %v1189_v59, %v1189_v59  ;;  %v1211_v9 = vadd.f32 %v909_v61, %v1126_v19  ;;  %v356_v10 = vsel %vm247_vm1, %v322_v6, 0.0 }
  0xde   :  { %264 = vadd.xlane.f32.xlu1 %v263_v48  ;;  %v218_v2 = vpop.f32.mrf.mxu0 }
  0xdf   :  { %v1205_v5 = vadd.f32 %v1126_v19, %v218_v2  ;;  %v353_v8 = vsel %vm247_vm1, %v321_v3, 0.0  ;;  %v281_v16 = vsel %vm247_vm1, %v1211_v9, 0.0  ;;  %v324_v18 = vmul.f32 %v1211_v9, %v1211_v9 }
  0xe0   :  { %342 = vadd.xlane.f32.xlu0 %v341_v52  ;;  %v912_v7 = vpop.f32.mrf.mxu0 }
  0xe1   :  { %v278_v11 = vsel %vm247_vm1, %v1205_v5, 0.0  ;;  %v323_v14 = vmul.f32 %v1205_v5, %v1205_v5  ;;  %v1239_v26 = vadd.f32 %v912_v7, %v1126_v19  ;;  %v362_v27 = vsel %vm247_vm1, %v324_v18, 0.0 }
  0xe2   :  { %345 = vadd.xlane.f32.xlu1 %v344_v54  ;;  %v228_v13 = vpop.f32.mrf.mxu0 }
  0xe3   :  { %v1227_v17 = vadd.f32 %v1126_v19, %v228_v13  ;;  %v359_v24 = vsel %vm247_vm1, %v323_v14, 0.0  ;;  %v287_v34 = vsel %vm247_vm1, %v1239_v26, 0.0  ;;  %v326_v36 = vmul.f32 %v1239_v26, %v1239_v26 }
  0xe4   :  { %267 = vadd.xlane.f32.xlu0 %v266_v55  ;;  %v915_v22 = vpop.f32.mrf.mxu0 }
  0xe5   :  { %v284_v28 = vsel %vm247_vm1, %v1227_v17, 0.0  ;;  %v325_v32 = vmul.f32 %v1227_v17, %v1227_v17  ;;  %v1258_v38 = vadd.f32 %v915_v22, %v1126_v19  ;;  %v368_v40 = vsel %vm247_vm1, %v326_v36, 0.0 }
  0xe6   :  { %270 = vadd.xlane.f32.xlu1 %v269_v58  ;;  %v238_v31 = vpop.f32.mrf.mxu0 }
  0xe7   :  { %v1252_v35 = vadd.f32 %v1126_v19, %v238_v31  ;;  %v365_v37 = vsel %vm247_vm1, %v325_v32, 0.0  ;;  %v293_v44 = vsel %vm247_vm1, %v1258_v38, 0.0  ;;  %v328_v45 = vmul.f32 %v1258_v38, %v1258_v38 }
  0xe8   :  { %348 = vadd.xlane.f32.xlu0 %v347_v62 }
  0xe9   :  { %v290_v41 = vsel %vm247_vm1, %v1252_v35, 0.0  ;;  %v327_v42 = vmul.f32 %v1252_v35, %v1252_v35  ;;  %v374_v46 = vsel %vm247_vm1, %v328_v45, 0.0 }
  0xea   :  { %351 = vadd.xlane.f32.xlu1 %v350_v0 }
  0xeb   :  { %v371_v19 = vsel %vm247_vm1, %v327_v42, 0.0 }
  0xec   :  { %273 = vadd.xlane.f32.xlu0 %v272_v1 }
  0xee   :  { %276 = vadd.xlane.f32.xlu1 %v275_v4 }
  0xf0   :  { %354 = vadd.xlane.f32.xlu0 %v353_v8 }
  0xf2   :  { %357 = vadd.xlane.f32.xlu1 %v356_v10 }
  0xf4   :  { %279 = vadd.xlane.f32.xlu0 %v278_v11 }
  0xf6   :  { %282 = vadd.xlane.f32.xlu1 %v281_v16 }
  0xf8   :  { %360 = vadd.xlane.f32.xlu0 %v359_v24 }
  0xfa   :  { %363 = vadd.xlane.f32.xlu1 %v362_v27 }
  0xfc   :  { %285 = vadd.xlane.f32.xlu0 %v284_v28 }
  0xfe   :  { %288 = vadd.xlane.f32.xlu1 %v287_v34 }
 0x100   :  { %366 = vadd.xlane.f32.xlu0 %v365_v37 }
 0x102   :  { %369 = vadd.xlane.f32.xlu1 %v368_v40 }
 0x104   :  { %291 = vadd.xlane.f32.xlu0 %v290_v41 }
 0x106   :  { %294 = vadd.xlane.f32.xlu1 %v293_v44 }
 0x108   :  { %372 = vadd.xlane.f32.xlu0 %v371_v19 }
 0x10a   :  { %375 = vadd.xlane.f32.xlu1 %v374_v46 }
 0x155   :  { %v253_v47 = vpop.xlane.xlu0 %252 }
 0x156   :  { %v298_v48 = vmul.f32 0.027777778, %v253_v47 }
 0x157   :  { %v334_v50 = vpop.xlane.xlu1 %333 }
 0x158   :  { %v394_v51 = vmul.f32 %v298_v48, %v298_v48  ;;  %v378_v52 = vmul.f32 0.027777778, %v334_v50  ;;  %v442_v36 = vsub.f32 %v1129_v21, %v298_v48  ;;  %v1293_v50 = vld [vmem:[%s1440_s3] ss:$0 sm:$0xff] }
 0x159   :  { %v250_v54 = vpop.xlane.xlu0 %249 }
 0x15a   :  { %v410_v55 = vsub.f32 %v378_v52, %v394_v51  ;;  %v297_v56 = vmul.f32 0.027777778, %v250_v54 }
 0x15b   :  { %v331_v57 = vpop.xlane.xlu1 %330 }
 0x15c   :  { %v426_v58 = vmax.f32 %v410_v55, 0.0  ;;  %v393_v60 = vmul.f32 %v297_v56, %v297_v56  ;;  %v377_v61 = vmul.f32 0.027777778, %v331_v57  ;;  %v441_v48 = vsub.f32 %v1132_v23, %v297_v56  ;;  %v1299_v55 = vld [vmem:[%s1441_s4] ss:$0 sm:$0xff] }
 0x15d   :  { %v256_v62 = vpop.xlane.xlu0 %255 }
 0x15e   :  { %v458_v0 = vadd.f32 1e-05, %v426_v58  ;;  %v409_v1 = vsub.f32 %v377_v61, %v393_v60  ;;  %v1271_v2 = vmul.f32 0.027777778, %v256_v62 }
 0x15f   :  { %v259_v3 = vpop.xlane.xlu1 %258 }
 0x160   :  { %953 = vrsqrt.f32 %v458_v0  ;;  %v425_v4 = vmax.f32 %v409_v1, 0.0  ;;  %v1273_v6 = vmul.f32 0.027777778, %v259_v3  ;;  %v395_v10 = vmul.f32 %v1271_v2, %v1271_v2 }
 0x161   :  { %v337_v7 = vpop.xlane.xlu0 %336 }
 0x162   :  { %v457_v8 = vadd.f32 1e-05, %v425_v4  ;;  %v379_v11 = vmul.f32 0.027777778, %v337_v7  ;;  %v396_v13 = vmul.f32 %v1273_v6, %v1273_v6 }
 0x163   :  { %v340_v12 = vpop.xlane.xlu1 %339 }
 0x164   :  { %955 = vrsqrt.f32 %v457_v8  ;;  %v411_v14 = vsub.f32 %v379_v11, %v395_v10  ;;  %v380_v15 = vmul.f32 0.027777778, %v340_v12 }
 0x165   :  { %v262_v16 = vpop.xlane.xlu0 %261 }
 0x166   :  { %v427_v18 = vmax.f32 %v411_v14, 0.0  ;;  %v412_v20 = vsub.f32 %v380_v15, %v396_v13  ;;  %v1279_v22 = vmul.f32 0.027777778, %v262_v16 }
 0x167   :  { %v265_v24 = vpop.xlane.xlu1 %264 }
 0x168   :  { %v459_v25 = vadd.f32 1e-05, %v427_v18  ;;  %v428_v27 = vmax.f32 %v412_v20, 0.0  ;;  %v1281_v28 = vmul.f32 0.027777778, %v265_v24  ;;  %v397_v32 = vmul.f32 %v1279_v22, %v1279_v22 }
 0x169   :  { %v343_v29 = vpop.xlane.xlu0 %342  ;;  %v443_v18 = vsub.f32 %v1142_v30, %v1271_v2  ;;  %v444_v24 = vsub.f32 %v1147_v33, %v1273_v6 }
 0x16a   :  { %957 = vrsqrt.f32 %v459_v25  ;;  %v460_v31 = vadd.f32 1e-05, %v428_v27  ;;  %v381_v34 = vmul.f32 0.027777778, %v343_v29  ;;  %v398_v40 = vmul.f32 %v1281_v28, %v1281_v28 }
 0x16b   :  { %v346_v37 = vpop.xlane.xlu1 %345 }
 0x16c   :  { %959 = vrsqrt.f32 %v460_v31  ;;  %v413_v41 = vsub.f32 %v381_v34, %v397_v32  ;;  %v382_v42 = vmul.f32 0.027777778, %v346_v37 }
 0x16d   :  { %v954_v44 = vpop.eup %953  ;;  %v268_v45 = vpop.xlane.xlu0 %267 }
 0x16e   :  { %v429_v19 = vmax.f32 %v413_v41, 0.0  ;;  %v414_v46 = vsub.f32 %v382_v42, %v398_v40  ;;  %v1288_v47 = vmul.f32 0.027777778, %v268_v45  ;;  %v490_v51 = vmul.f32 %v954_v44, %v442_v36 }
 0x16f   :  { %v271_v21 = vpop.xlane.xlu1 %270 }
 0x170   :  { %v461_v52 = vadd.f32 1e-05, %v429_v19  ;;  %v430_v54 = vmax.f32 %v414_v46, 0.0  ;;  %v399_v58 = vmul.f32 %v1288_v47, %v1288_v47  ;;  %v1303_v60 = vmul.f32 0.027777778, %v271_v21 }
 0x171   :  { %v956_v57 = vpop.eup %955  ;;  %v349_v61 = vpop.xlane.xlu0 %348  ;;  %v513_v62 = vmul.f32 %v1293_v50, %v490_v51 }
 0x172   :  { %961 = vrsqrt.f32 %v461_v52  ;;  %v462_v0 = vadd.f32 1e-05, %v430_v54  ;;  %v383_v1 = vmul.f32 0.027777778, %v349_v61  ;;  %v489_v23 = vmul.f32 %v956_v57, %v441_v48 }
 0x173   :  { %v400_v56 = vmul.f32 %v1303_v60, %v1303_v60  ;;  %v352_v3 = vpop.xlane.xlu1 %351  ;;  %v536_v4 = vadd.f32 %v1299_v55, %v513_v62 }
 0x174   :  { %963 = vrsqrt.f32 %v462_v0  ;;  %v415_v7 = vsub.f32 %v383_v1, %v399_v58  ;;  %v384_v8 = vmul.f32 0.027777778, %v352_v3  ;;  %v512_v10 = vmul.f32 %v1293_v50, %v489_v23 }
 0x175   :  { %v274_v11 = vpop.xlane.xlu0 %273  ;;  %v552_v29 = vmax.f32 %v536_v4, 0.0  ;;  %v445_v58 = vsub.f32 %v1157_v39, %v1279_v22  ;;  %v446_v0 = vsub.f32 %v1163_v43, %v1281_v28 }
 0x176   :  { %v431_v12 = vmax.f32 %v415_v7, 0.0  ;;  %v416_v13 = vsub.f32 %v384_v8, %v400_v56  ;;  %v1310_v14 = vmul.f32 0.027777778, %v274_v11  ;;  %v535_v15 = vadd.f32 %v1299_v55, %v512_v10 }
 0x177   :  { %v958_v16 = vpop.eup %957  ;;  %v277_v20 = vpop.xlane.xlu1 %276 }
 0x178   :  { %v463_v25 = vadd.f32 1e-05, %v431_v12  ;;  %v432_v27 = vmax.f32 %v416_v13, 0.0  ;;  %v401_v32 = vmul.f32 %v1310_v14, %v1310_v14  ;;  %v1319_v34 = vmul.f32 0.027777778, %v277_v20 }
 0x179   :  { %v960_v31 = vpop.eup %959  ;;  %v355_v36 = vpop.xlane.xlu0 %354  ;;  %v551_v37 = vmax.f32 %v535_v15, 0.0  ;;  %v491_v40 = vmul.f32 %v958_v16, %v443_v18 }
 0x17a   :  { %965 = vrsqrt.f32 %v463_v25  ;;  %v464_v41 = vadd.f32 1e-05, %v432_v27  ;;  %v385_v42 = vmul.f32 0.027777778, %v355_v36  ;;  %v492_v30 = vmul.f32 %v960_v31, %v444_v24 }
 0x17b   :  { %v402_v2 = vmul.f32 %v1319_v34, %v1319_v34  ;;  %926 = vmatprep.mubr.msk.f32.mxu1 %vm247_vm1, %v551_v37  ;;  %v358_v33 = vpop.xlane.xlu1 %357  ;;  %v514_v6 = vmul.f32 %v1293_v50, %v491_v40  ;;  %v448_v40 = vsub.f32 %v1179_v53, %v1303_v60 }
 0x17c   :  { %967 = vrsqrt.f32 %v464_v41  ;;  %v417_v44 = vsub.f32 %v385_v42, %v401_v32  ;;  %v386_v45 = vmul.f32 0.027777778, %v358_v33  ;;  %927 = vmatmul.mubr.msk.f32.vlgmr.msra.gmra.mxu1 %vm247_vm1, %v552_v29  ;;  %v515_v19 = vmul.f32 %v1293_v50, %v492_v30 }
 0x17d   :  { %v280_v46 = vpop.xlane.xlu0 %279  ;;  %v537_v51 = vadd.f32 %v1299_v55, %v514_v6  ;;  %v447_v32 = vsub.f32 %v1173_v49, %v1288_v47 }
 0x17e   :  { %v433_v21 = vmax.f32 %v417_v44, 0.0  ;;  %v418_v48 = vsub.f32 %v386_v45, %v402_v2  ;;  %v1328_v52 = vmul.f32 0.027777778, %v280_v46  ;;  %v538_v54 = vadd.f32 %v1299_v55, %v515_v19 }
 0x17f   :  { %v962_v57 = vpop.eup %961  ;;  %v283_v61 = vpop.xlane.xlu1 %282  ;;  %v553_v62 = vmax.f32 %v537_v51, 0.0 }
 0x180   :  { %v465_v1 = vadd.f32 1e-05, %v433_v21  ;;  %v434_v23 = vmax.f32 %v418_v48, 0.0  ;;  %v403_v3 = vmul.f32 %v1328_v52, %v1328_v52  ;;  %v1337_v4 = vmul.f32 0.027777778, %v283_v61 }
 0x181   :  { %v964_v56 = vpop.eup %963  ;;  %929 = vmatprep.mubr.msk.f32.mxu1 %vm247_vm1, %v553_v62  ;;  %v361_v7 = vpop.xlane.xlu0 %360  ;;  %v554_v8 = vmax.f32 %v538_v54, 0.0  ;;  %v493_v10 = vmul.f32 %v962_v57, %v445_v58 }
 0x182   :  { %969 = vrsqrt.f32 %v465_v1  ;;  %v466_v39 = vadd.f32 1e-05, %v434_v23  ;;  %v387_v22 = vmul.f32 0.027777778, %v361_v7  ;;  %v494_v11 = vmul.f32 %v964_v56, %v446_v0 }
 0x183   :  { %v404_v43 = vmul.f32 %v1337_v4, %v1337_v4  ;;  %930 = vmatmul.mubr.msk.f32.gmra.mxu1 %vm247_vm1, %v554_v8  ;;  %v364_v28 = vpop.xlane.xlu1 %363  ;;  %v516_v12 = vmul.f32 %v1293_v50, %v493_v10  ;;  %v449_v23 = vsub.f32 %v1189_v59, %v1310_v14  ;;  %v450_v7 = vsub.f32 %v1195_v63, %v1319_v34 }
 0x184   :  { %971 = vrsqrt.f32 %v466_v39  ;;  %v419_v13 = vsub.f32 %v387_v22, %v403_v3  ;;  %v388_v15 = vmul.f32 0.027777778, %v364_v28  ;;  %v517_v16 = vmul.f32 %v1293_v50, %v494_v11 }
 0x185   :  { %v286_v18 = vpop.xlane.xlu0 %285  ;;  %v539_v20 = vadd.f32 %v1299_v55, %v516_v12 }
 0x186   :  { %v435_v24 = vmax.f32 %v419_v13, 0.0  ;;  %v420_v25 = vsub.f32 %v388_v15, %v404_v43  ;;  %v1346_v27 = vmul.f32 0.027777778, %v286_v18  ;;  %v540_v29 = vadd.f32 %v1299_v55, %v517_v16 }
 0x187   :  { %v966_v31 = vpop.eup %965  ;;  %v289_v36 = vpop.xlane.xlu1 %288  ;;  %v555_v37 = vmax.f32 %v539_v20, 0.0 }
 0x188   :  { %v467_v41 = vadd.f32 1e-05, %v435_v24  ;;  %v436_v42 = vmax.f32 %v420_v25, 0.0  ;;  %v405_v2 = vmul.f32 %v1346_v27, %v1346_v27  ;;  %v1355_v33 = vmul.f32 0.027777778, %v289_v36 }
 0x189   :  { %v968_v30 = vpop.eup %967  ;;  %932 = vmatprep.mubr.msk.f32.mxu1 %vm247_vm1, %v555_v37  ;;  %v367_v6 = vpop.xlane.xlu0 %366  ;;  %v556_v44 = vmax.f32 %v540_v29, 0.0  ;;  %v495_v45 = vmul.f32 %v966_v31, %v447_v32  ;;  %v451_v25 = vsub.f32 %v1205_v5, %v1328_v52  ;;  %v452_v37 = vsub.f32 %v1211_v9, %v1337_v4 }
 0x18a   :  { %973 = vrsqrt.f32 %v467_v41  ;;  %v468_v49 = vadd.f32 1e-05, %v436_v42  ;;  %v389_v47 = vmul.f32 0.027777778, %v367_v6  ;;  %v496_v19 = vmul.f32 %v968_v30, %v448_v40 }
 0x18b   :  { %v406_v53 = vmul.f32 %v1355_v33, %v1355_v33  ;;  %933 = vmatmul.mubr.msk.f32.gmra.mxu1 %vm247_vm1, %v556_v44  ;;  %v370_v60 = vpop.xlane.xlu1 %369  ;;  %v518_v46 = vmul.f32 %v1293_v50, %v495_v45  ;;  %v453_v4 = vsub.f32 %v1227_v17, %v1346_v27 }
 0x18c   :  { %975 = vrsqrt.f32 %v468_v49  ;;  %v421_v51 = vsub.f32 %v389_v47, %v405_v2  ;;  %v390_v21 = vmul.f32 0.027777778, %v370_v60  ;;  %v519_v48 = vmul.f32 %v1293_v50, %v496_v19 }
 0x18d   :  { %v292_v54 = vpop.xlane.xlu0 %291  ;;  %v541_v57 = vadd.f32 %v1299_v55, %v518_v46 }
 0x18e   :  { %v437_v58 = vmax.f32 %v421_v51, 0.0  ;;  %v422_v61 = vsub.f32 %v390_v21, %v406_v53  ;;  %v1364_v62 = vmul.f32 0.027777778, %v292_v54  ;;  %v542_v0 = vadd.f32 %v1299_v55, %v519_v48 }
 0x18f   :  { %v970_v1 = vpop.eup %969  ;;  %v295_v56 = vpop.xlane.xlu1 %294  ;;  %v557_v3 = vmax.f32 %v541_v57, 0.0  ;;  %v454_v53 = vsub.f32 %v1239_v26, %v1355_v33 }
 0x190   :  { %v469_v8 = vadd.f32 1e-05, %v437_v58  ;;  %v438_v10 = vmax.f32 %v422_v61, 0.0  ;;  %v407_v22 = vmul.f32 %v1364_v62, %v1364_v62  ;;  %v1373_v11 = vmul.f32 0.027777778, %v295_v56 }
 0x191   :  { %v972_v39 = vpop.eup %971  ;;  %935 = vmatprep.mubr.msk.f32.mxu1 %vm247_vm1, %v557_v3  ;;  %v373_v43 = vpop.xlane.xlu0 %372  ;;  %v558_v28 = vmax.f32 %v542_v0, 0.0  ;;  %v497_v12 = vmul.f32 %v970_v1, %v449_v23  ;;  %v455_v27 = vsub.f32 %v1252_v35, %v1364_v62 }
 0x192   :  { %977 = vrsqrt.f32 %v469_v8  ;;  %v470_v59 = vadd.f32 1e-05, %v438_v10  ;;  %v391_v14 = vmul.f32 0.027777778, %v373_v43  ;;  %v498_v13 = vmul.f32 %v972_v39, %v450_v7  ;;  %v828_v8 = vld [vmem:[%s1443_s6] ss:$0 sm:$0xff] }
 0x193   :  { %v408_v63 = vmul.f32 %v1373_v11, %v1373_v11  ;;  %936 = vmatmul.mubr.msk.f32.gmra.mxu1 %vm247_vm1, %v558_v28  ;;  %v376_v34 = vpop.xlane.xlu1 %375  ;;  %v520_v15 = vmul.f32 %v1293_v50, %v497_v12  ;;  %v456_v58 = vsub.f32 %v1258_v38, %v1373_v11 }
 0x194   :  { %979 = vrsqrt.f32 %v470_v59  ;;  %v423_v16 = vsub.f32 %v391_v14, %v407_v22  ;;  %v392_v18 = vmul.f32 0.027777778, %v376_v34  ;;  %v521_v20 = vmul.f32 %v1293_v50, %v498_v13 }
 0x195   :  { %v543_v24 = vadd.f32 %v1299_v55, %v520_v15 }
 0x196   :  { %v439_v29 = vmax.f32 %v423_v16, 0.0  ;;  %v424_v31 = vsub.f32 %v392_v18, %v408_v63  ;;  %v544_v32 = vadd.f32 %v1299_v55, %v521_v20 }
 0x197   :  { %v974_v36 = vpop.eup %973  ;;  %v559_v40 = vmax.f32 %v543_v24, 0.0 }
 0x198   :  { %v471_v41 = vadd.f32 1e-05, %v439_v29  ;;  %v440_v42 = vmax.f32 %v424_v31, 0.0  ;;  %v560_v30 = vmax.f32 %v544_v32, 0.0  ;;  %v499_v2 = vmul.f32 %v974_v36, %v451_v25 }
 0x199   :  { %v976_v6 = vpop.eup %975  ;;  %938 = vmatprep.mubr.msk.f32.mxu1 %vm247_vm1, %v559_v40 }
 0x19a   :  { %981 = vrsqrt.f32 %v471_v41  ;;  %v472_v44 = vadd.f32 1e-05, %v440_v42  ;;  %939 = vmatmul.mubr.msk.f32.gmra.mxu1 %vm247_vm1, %v560_v30  ;;  %v522_v5 = vmul.f32 %v1293_v50, %v499_v2  ;;  %v500_v52 = vmul.f32 %v976_v6, %v452_v37 }
 0x19c   :  { %983 = vrsqrt.f32 %v472_v44  ;;  %v545_v45 = vadd.f32 %v1299_v55, %v522_v5  ;;  %v523_v9 = vmul.f32 %v1293_v50, %v500_v52 }
 0x19e   :  { %v561_v49 = vmax.f32 %v545_v45, 0.0  ;;  %v546_v47 = vadd.f32 %v1299_v55, %v523_v9 }
 0x19f   :  { %v978_v19 = vpop.eup %977 }
 0x1a0   :  { %941 = vmatprep.mubr.msk.f32.mxu1 %vm247_vm1, %v561_v49  ;;  %v562_v60 = vmax.f32 %v546_v47, 0.0  ;;  %v501_v46 = vmul.f32 %v978_v19, %v453_v4 }
 0x1a1   :  { %v980_v51 = vpop.eup %979 }
 0x1a2   :  { %942 = vmatmul.mubr.msk.f32.gmra.mxu1 %vm247_vm1, %v562_v60  ;;  %v524_v21 = vmul.f32 %v1293_v50, %v501_v46  ;;  %v502_v48 = vmul.f32 %v980_v51, %v454_v53 }
 0x1a4   :  { %v547_v54 = vadd.f32 %v1299_v55, %v524_v21  ;;  %v525_v17 = vmul.f32 %v1293_v50, %v502_v48 }
 0x1a6   :  { %v563_v57 = vmax.f32 %v547_v54, 0.0  ;;  %v548_v26 = vadd.f32 %v1299_v55, %v525_v17 }
 0x1a7   :  { %v982_v33 = vpop.eup %981 }
 0x1a8   :  { %944 = vmatprep.mubr.msk.f32.mxu1 %vm247_vm1, %v563_v57  ;;  %v564_v61 = vmax.f32 %v548_v26, 0.0  ;;  %v503_v0 = vmul.f32 %v982_v33, %v455_v27 }
 0x1a9   :  { %v984_v1 = vpop.eup %983 }
 0x1aa   :  { %945 = vmatmul.mubr.msk.f32.gmra.mxu1 %vm247_vm1, %v564_v61  ;;  %v526_v23 = vmul.f32 %v1293_v50, %v503_v0  ;;  %v504_v56 = vmul.f32 %v984_v1, %v456_v58 }
 0x1ac   :  { %v549_v3 = vadd.f32 %v1299_v55, %v526_v23  ;;  %v527_v35 = vmul.f32 %v1293_v50, %v504_v56 }
 0x1ae   :  { %v565_v62 = vmax.f32 %v549_v3, 0.0  ;;  %v550_v7 = vadd.f32 %v1299_v55, %v527_v35 }
 0x1b0   :  { %947 = vmatprep.mubr.msk.f32.mxu1 %vm247_vm1, %v565_v62  ;;  %v566_v38 = vmax.f32 %v550_v7, 0.0 }
 0x1b2   :  { %948 = vmatmul.mubr.msk.f32.gmra.mxu1 %vm247_vm1, %v566_v38 }
 0x23c   :  { %v928_v10 = vpop.f32.mrf.mxu1 }
 0x23d   :  { %v703_v39 = vadd.f32 %v928_v10, %v828_v8 }
 0x23e   :  { %v697_v22 = vpop.f32.mrf.mxu1 }
 0x23f   :  { %778 = vst.msk [vmem:[#allocation2 + $0x8] sm:$0xff] %vm776_vm3, %v703_v39  ;;  %v698_v11 = vadd.f32 %v828_v8, %v697_v22 }
 0x241   :  { %777 = vst.msk [vmem:[#allocation2] sm:$0xff] %vm776_vm3, %v698_v11 }
 0x243   :  { %v931_v50 = vpop.f32.mrf.mxu1 }
 0x244   :  { %v713_v55 = vadd.f32 %v931_v50, %v828_v8 }
 0x245   :  { %v707_v43 = vpop.f32.mrf.mxu1 }
 0x246   :  { %780 = vst.msk [vmem:[#allocation2 + $0x18] sm:$0xff] %vm776_vm3, %v713_v55  ;;  %v708_v28 = vadd.f32 %v828_v8, %v707_v43 }
 0x248   :  { %779 = vst.msk [vmem:[#allocation2 + $0x10] sm:$0xff] %vm776_vm3, %v708_v28 }
 0x24b   :  { %v934_v12 = vpop.f32.mrf.mxu1 }
 0x24c   :  { %v723_v59 = vadd.f32 %v934_v12, %v828_v8 }
 0x24d   :  { %v717_v14 = vpop.f32.mrf.mxu1 }
 0x24e   :  { %782 = vst.msk [vmem:[#allocation2 + $0x28] sm:$0xff] %vm776_vm3, %v723_v59  ;;  %v718_v13 = vadd.f32 %v828_v8, %v717_v14 }
 0x250   :  { %781 = vst.msk [vmem:[#allocation2 + $0x20] sm:$0xff] %vm776_vm3, %v718_v13 }
 0x253   :  { %v937_v63 = vpop.f32.mrf.mxu1 }
 0x254   :  { %v733_v34 = vadd.f32 %v937_v63, %v828_v8 }
 0x255   :  { %v727_v15 = vpop.f32.mrf.mxu1 }
 0x256   :  { %784 = vst.msk [vmem:[#allocation2 + $0x38] sm:$0xff] %vm776_vm3, %v733_v34  ;;  %v728_v16 = vadd.f32 %v828_v8, %v727_v15 }
 0x258   :  { %783 = vst.msk [vmem:[#allocation2 + $0x30] sm:$0xff] %vm776_vm3, %v728_v16 }
 0x25a   :  { %v940_v18 = vpop.f32.mrf.mxu1 }
 0x25b   :  { %v743_v20 = vadd.f32 %v940_v18, %v828_v8 }
 0x25c   :  { %v737_v24 = vpop.f32.mrf.mxu1 }
 0x25d   :  { %786 = vst.msk [vmem:[#allocation2 + $0x48] sm:$0xff] %vm776_vm3, %v743_v20  ;;  %v738_v25 = vadd.f32 %v828_v8, %v737_v24 }
 0x25f   :  { %785 = vst.msk [vmem:[#allocation2 + $0x40] sm:$0xff] %vm776_vm3, %v738_v25 }
 0x262   :  { %v943_v29 = vpop.f32.mrf.mxu1 }
 0x263   :  { %v753_v31 = vadd.f32 %v943_v29, %v828_v8 }
 0x264   :  { %v747_v32 = vpop.f32.mrf.mxu1 }
 0x265   :  { %788 = vst.msk [vmem:[#allocation2 + $0x58] sm:$0xff] %vm776_vm3, %v753_v31  ;;  %v748_v36 = vadd.f32 %v828_v8, %v747_v32 }
 0x267   :  { %787 = vst.msk [vmem:[#allocation2 + $0x50] sm:$0xff] %vm776_vm3, %v748_v36 }
 0x26a   :  { %v946_v37 = vpop.f32.mrf.mxu1 }
 0x26b   :  { %v763_v40 = vadd.f32 %v946_v37, %v828_v8 }
 0x26c   :  { %v757_v41 = vpop.f32.mrf.mxu1 }
 0x26d   :  { %790 = vst.msk [vmem:[#allocation2 + $0x68] sm:$0xff] %vm776_vm3, %v763_v40  ;;  %v758_v42 = vadd.f32 %v828_v8, %v757_v41 }
 0x26f   :  { %789 = vst.msk [vmem:[#allocation2 + $0x60] sm:$0xff] %vm776_vm3, %v758_v42 }
 0x272   :  { %v949_v30 = vpop.f32.mrf.mxu1 }
 0x273   :  { %v773_v2 = vadd.f32 %v949_v30, %v828_v8 }
 0x274   :  { %v767_v6 = vpop.f32.mrf.mxu1 }
 0x275   :  { %792 = vst.msk [vmem:[#allocation2 + $0x78] sm:$0xff] %vm776_vm3, %v773_v2  ;;  %v768_v44 = vadd.f32 %v828_v8, %v767_v6 }
 0x277   :  { %791 = vst.msk [vmem:[#allocation2 + $0x70] sm:$0xff] %vm776_vm3, %v768_v44 }
 0x278   :  { %797 = vsyncadd [#allocation3], 1984  ;;  %s1007_s6 = smov [#allocation2]  }
 0x279   :  { %s798_s27 = sshll.u32 %s1007_s6, 4  ;;  %s799_s27 = int_to_ptr.vmem [resolvable:$true] %s798_s27 }
 0x27a   :  { %s985_s28 = scalar_lea.vmem %s799_s27, 64  ;;  %s989_s29 = scalar_lea.vmem %s799_s27, 2048 }
 0x27b   :  { %p986_p0 = scmp.ne.s32.totalorder %s799_s27, %s985_s28  ;;  %p990_p1 = scmp.lt.s32.totalorder %s799_s27, %s799_s27 }
 0x27c   :  { %p991_p2 = scmp.lt.s32.totalorder %s989_s29, %s985_s28 }
 0x27e   :  { %p992_p3 = por %p991_p2, %p990_p1 }
 0x280   :  { %p993_p4 = pnand %p992_p3, %p986_p0 }
 0x282   :  { %996 = shalt.err (!%p993_p4)
}
 0x283   :  { %s1008_s30 = smov 64   ;;  %s1009_s8 = smov 4  }
 0x284   :  { %804 = dma.vmem_to_hbm [thread:$0]  %s799_s27, 64, %s1444_s7, [#allocation3], %s1008_s30, %s1008_s30, %s1009_s8  }
 0x285   :  { %1005 = dma.done.wait [#allocation3], 2048  }
 0x286   :  { %1006 = vsyncadd [#allocation3], 4294965248 }
 0x287   :  { %808 = vsyncpa [#allocation3], 1 }

</bundles_post_ra>
